<compile_context>
chip_gen: v7x
topology: tpu7x:2x2x1
jax: 0.10.0
libtpu: 0.0.40
codegen_flags: <defaults>
</compile_context>

<pallas_src>
import jax
import jax.numpy as jnp
from jax.experimental import pallas as pl
from jax.experimental.pallas import tpu as pltpu


def attn_decoder_seq_kernel(
    tok_ref,      # (T, B, 1) int32  token ids (whole sequence, VMEM-resident)
    h0_ref,       # (B, H)           initial hidden state
    feat_ref,     # (B, L, F)        attention features
    embtab_ref,   # (V, H)           embedding table
    wemb_ref,     # (H, H+L)         [W_comb_emb | W_attn_emb]
    wh_ref,       # (H, 3H+L)        [W_hh (r|z|n) | W_attn_h]
    wapp_ref,     # (F, H)           W_comb_attn_applied
    wx_ref,       # (H, 3H)          W_ih (r|z|n)
    wout_ref,     # (H, V)           output head
    bias_ref,     # (4, >=V)         rows: [b_hh|b_attn], [b_ih], [b_comb], [b_out]
    logp_ref,     # out (1, B, V)    per-step log-probs
    hout_ref,     # out (B, H)       hidden state, carried across grid steps
):
    f32 = jnp.float32
    t = pl.program_id(0)
    B, H = hout_ref.shape
    L, F = feat_ref.shape[1], feat_ref.shape[2]
    V = embtab_ref.shape[0]

    @pl.when(t == 0)
    def _init():
        hout_ref[...] = h0_ref[...]

    h = hout_ref[...]                                        # carried hidden (B, H)

    # --- embedding lookup, in-kernel, as a one-hot MXU matmul ----------------
    tok = tok_ref[t]                                         # (B, 1) int32
    onehot = (jax.lax.broadcasted_iota(jnp.int32, (B, V), 1) == tok).astype(f32)
    emb = jnp.dot(onehot, embtab_ref[...], preferred_element_type=f32)    # (B, H)

    # --- fused dots: everything multiplied by h / by emb (no lane concats) ---
    h_all = (jnp.dot(h, wh_ref[...], preferred_element_type=f32)
             + bias_ref[0:1, :3 * H + L])                    # (B, 3H+L) = [gh | attn_h]
    emb_all = jnp.dot(emb, wemb_ref[...], preferred_element_type=f32)     # (B, H+L)

    # --- attention over the L feature slots (exact softmax) ------------------
    attn_logits = emb_all[:, H:] + h_all[:, 3 * H:]                       # (B, L)
    a = jnp.exp(attn_logits - jnp.max(attn_logits, axis=-1, keepdims=True))
    attn_w = a / jnp.sum(a, axis=-1, keepdims=True)                       # (B, L)

    # attn_applied via broadcast-multiply + reduce (VPU/XLU), replacing the
    # previously unrolled batched einsum.
    attn_applied = jnp.sum(attn_w[:, :, None] * feat_ref[...], axis=1)    # (B, F)

    # --- attn_combine + ReLU (the emb part is already in emb_all) ------------
    x = jnp.maximum(
        emb_all[:, :H]
        + jnp.dot(attn_applied, wapp_ref[...], preferred_element_type=f32)
        + bias_ref[2:3, :H],
        0.0)                                                              # (B, H)

    # --- single-step GRU, PyTorch gate order r|z|n; b_hh folded into h_all ---
    gi = jnp.dot(x, wx_ref[...], preferred_element_type=f32) + bias_ref[1:2, :3 * H]
    rz = jax.nn.sigmoid(gi[:, :2 * H] + h_all[:, :2 * H])                 # fused r,z
    r, z = rz[:, :H], rz[:, H:]
    n = jnp.tanh(gi[:, 2 * H:] + r * h_all[:, 2 * H:3 * H])               # b_hn inside r*(.)
    h_new = (1.0 - z) * n + z * h                                         # (B, H)

    # --- output head + log_softmax over the (lane-dense, V=128) vocab --------
    logits = jnp.dot(h_new, wout_ref[...], preferred_element_type=f32) + bias_ref[3:4, :V]
    shifted = logits - jnp.max(logits, axis=-1, keepdims=True)
    lse = jnp.log(jnp.sum(jnp.exp(shifted), axis=-1, keepdims=True))

    logp_ref[0] = shifted - lse
    hout_ref[...] = h_new


def pack_params(params):
    """One-time relayout of PyTorch-style params into MXU-friendly slabs.

    nn.Linear stores (out, in); transposed here to (in, out) so kernels
    compute x @ W + b.  GRU gate packing (r|z|n) preserved column-wise.
    Called once at parameter-setup time, NOT per decode step.
    """
    H = params["w_ih"].shape[1]
    L = params["w_attn"].shape[0]
    V = params["w_out"].shape[0]
    w_attn_t = jnp.asarray(params["w_attn"], jnp.float32).T    # (2H, L)
    w_comb_t = jnp.asarray(params["w_comb"], jnp.float32).T    # (H+F, H)
    w_hh_t = jnp.asarray(params["w_hh"], jnp.float32).T        # (H, 3H)
    w_ih_t = jnp.asarray(params["w_ih"], jnp.float32).T        # (H, 3H)

    width = max(V, 3 * H + L)

    def row(v):
        v = jnp.asarray(v, jnp.float32)
        return jnp.pad(v, (0, width - v.shape[0]))

    return {
        "emb_table": jnp.asarray(params["embedding"], jnp.float32),       # (V, H)
        "w_emb": jnp.concatenate([w_comb_t[:H], w_attn_t[:H]], axis=1),   # (H, H+L)
        "w_h":   jnp.concatenate([w_hh_t, w_attn_t[H:]], axis=1),         # (H, 3H+L)
        "w_app": w_comb_t[H:],                                            # (F, H)
        "w_x":   w_ih_t,                                                  # (H, 3H)
        "w_out": jnp.asarray(params["w_out"], jnp.float32).T,             # (H, V)
        "biases": jnp.stack([
            row(jnp.concatenate([jnp.asarray(params["b_hh"], jnp.float32),
                                 jnp.asarray(params["b_attn"], jnp.float32)])),
            row(params["b_ih"]),
            row(params["b_comb"]),
            row(params["b_out"]),
        ]),                                                               # (4, width)
    }


def attn_decoder_forward_seq(tokens, hidden0, all_features, packed):
    """Run T teacher-forced decode steps in ONE pallas_call (grid=(T,))."""
    T, B = tokens.shape
    H = hidden0.shape[-1]
    V = packed["emb_table"].shape[0]
    L, F = all_features.shape[1], all_features.shape[2]
    W = packed["biases"].shape[1]

    tok3 = tokens.astype(jnp.int32)[:, :, None]               # (T, B, 1)
    h0 = hidden0[0].astype(jnp.float32)                       # (B, H)
    feats = all_features.astype(jnp.float32)

    def resident(*shape):  # constant index_map -> DMA'd once, resident across steps
        return pl.BlockSpec(shape, lambda t: (0,) * len(shape))

    in_specs = [
        resident(T, B, 1),        # token ids
        resident(B, H),           # h0
        resident(B, L, F),        # features
        resident(V, H),           # embedding table
        resident(H, H + L),       # w_emb
        resident(H, 3 * H + L),   # w_h
        resident(F, H),           # w_app
        resident(H, 3 * H),       # w_x
        resident(H, V),           # w_out
        resident(4, W),           # packed biases
    ]
    out_specs = (
        pl.BlockSpec((1, B, V), lambda t: (t, 0, 0)),         # per-step log-probs
        pl.BlockSpec((B, H), lambda t: (0, 0)),               # carried / final hidden
    )

    logp, h_final = pl.pallas_call(
        attn_decoder_seq_kernel,
        out_shape=(jax.ShapeDtypeStruct((T, B, V), jnp.float32),
                   jax.ShapeDtypeStruct((B, H), jnp.float32)),
        grid_spec=pltpu.PrefetchScalarGridSpec(
            num_scalar_prefetch=0,
            grid=(T,),
            in_specs=in_specs,
            out_specs=out_specs,
        ),
        compiler_params=pltpu.CompilerParams(
            dimension_semantics=("arbitrary",)),              # sequential h carry
    )(tok3, h0, feats, packed["emb_table"], packed["w_emb"], packed["w_h"],
      packed["w_app"], packed["w_x"], packed["w_out"], packed["biases"])
    return logp, h_final[None]                                # hidden as (1, B, H)


def attn_decoder_forward(inp_tokens, hidden, all_features, packed):
    """Single decode step — the original module's forward() (T=1 grid)."""
    logp, h = attn_decoder_forward_seq(inp_tokens[None], hidden, all_features, packed)
    return logp[0], h


# ------------------------- pure-JAX reference (for checking) -----------------
def reference_forward_step(tok, hidden, all_features, params):
    emb = params["embedding"][tok]
    h = hidden[0]
    H = emb.shape[1]
    attn_logits = jnp.concatenate([emb, h], 1) @ params["w_attn"].T + params["b_attn"]
    attn_w = jax.nn.softmax(attn_logits, axis=1)
    attn_applied = jnp.einsum("bl,blf->bf", attn_w, all_features)
    x = jax.nn.relu(
        jnp.concatenate([emb, attn_applied], 1) @ params["w_comb"].T + params["b_comb"])
    gi = x @ params["w_ih"].T + params["b_ih"]
    gh = h @ params["w_hh"].T + params["b_hh"]
    r = jax.nn.sigmoid(gi[:, :H] + gh[:, :H])
    z = jax.nn.sigmoid(gi[:, H:2 * H] + gh[:, H:2 * H])
    n = jnp.tanh(gi[:, 2 * H:] + r * gh[:, 2 * H:])
    h_new = (1.0 - z) * n + z * h
    logits = h_new @ params["w_out"].T + params["b_out"]
    return jax.nn.log_softmax(logits, axis=1), h_new[None]


def reference_forward_seq(tokens, hidden, all_features, params):
    outs, h = [], hidden
    for t in range(tokens.shape[0]):
        logp, h = reference_forward_step(tokens[t], h, all_features, params)
        outs.append(logp)
    return jnp.stack(outs), h


def make_params(key, hidden_size, feature_dim, n_vocab, max_length):
    ks = jax.random.split(key, 11)
    s = 0.1
    H, F, V, L = hidden_size, feature_dim, n_vocab, max_length
    return {
        "embedding": s * jax.random.normal(ks[0], (V, H), jnp.float32),
        "w_attn":    s * jax.random.normal(ks[1], (L, 2 * H), jnp.float32),
        "b_attn":    s * jax.random.normal(ks[2], (L,), jnp.float32),
        "w_comb":    s * jax.random.normal(ks[3], (H, H + F), jnp.float32),
        "b_comb":    s * jax.random.normal(ks[4], (H,), jnp.float32),
        "w_ih":      s * jax.random.normal(ks[5], (3 * H, H), jnp.float32),
        "b_ih":      s * jax.random.normal(ks[6], (3 * H,), jnp.float32),
        "w_hh":      s * jax.random.normal(ks[7], (3 * H, H), jnp.float32),
        "b_hh":      s * jax.random.normal(ks[8], (3 * H,), jnp.float32),
        "w_out":     s * jax.random.normal(ks[9], (V, H), jnp.float32),
        "b_out":     s * jax.random.normal(ks[10], (V,), jnp.float32),
    }


if __name__ == "__main__":
    # Small shapes consistent with the module's forward:
    # batch=8 (full sublanes), hidden=32, feature_dim=16, max_length=8,
    # vocab=128 (lane-dense log-prob output), T=6 decode steps.
    B, H, F, L, V, T = 8, 32, 16, 8, 128, 6

    key = jax.random.PRNGKey(0)
    k_p, k_tok, k_h, k_f = jax.random.split(key, 4)

    params = make_params(k_p, H, F, V, L)
    packed = pack_params(params)                                  # once, not per step
    tokens = jax.random.randint(k_tok, (T, B), 0, V)              # teacher-forced word ids
    hidden0 = 0.1 * jax.random.normal(k_h, (1, B, H), jnp.float32)
    all_features = jax.random.normal(k_f, (B, L, F), jnp.float32)

    run_seq = jax.jit(attn_decoder_forward_seq)
    logp_all, h_final = run_seq(tokens, hidden0, all_features, packed)
    logp_all, h_final = jax.block_until_ready((logp_all, h_final))

    ref_logp_all, ref_h = reference_forward_seq(tokens, hidden0, all_features, params)

    assert logp_all.shape == (T, B, V) and h_final.shape == (1, B, H)
    # Exact softmax division in-kernel; tolerance only covers MXU-vs-XLA f32
    # matmul pass differences compounded over the T-step recurrence.
    assert jnp.allclose(logp_all, ref_logp_all, atol=2e-3, rtol=2e-3)
    assert jnp.allclose(h_final, ref_h, atol=2e-3, rtol=2e-3)

    # Single-step path (the original forward() signature), T=1 grid.
    run_step = jax.jit(attn_decoder_forward)
    logp1, h1 = jax.block_until_ready(run_step(tokens[0], hidden0, all_features, packed))
    ref_logp1, ref_h1 = reference_forward_step(tokens[0], hidden0, all_features, params)
    assert jnp.allclose(logp1, ref_logp1, atol=2e-3, rtol=2e-3)
    assert jnp.allclose(h1, ref_h1, atol=2e-3, rtol=2e-3)

    print("KERNEL_OK")
</pallas_src>

<mosaic_0001>
module attributes {stable_mosaic.version = 11 : i64} {
  func.func @attn_decoder_seq_kernel(%arg0: i32, %arg1: memref<6x8x1xi32, #tpu.memory_space<vmem>>, %arg2: memref<8x32xf32, #tpu.memory_space<vmem>>, %arg3: memref<8x8x16xf32, #tpu.memory_space<vmem>>, %arg4: memref<128x32xf32, #tpu.memory_space<vmem>>, %arg5: memref<32x40xf32, #tpu.memory_space<vmem>>, %arg6: memref<32x104xf32, #tpu.memory_space<vmem>>, %arg7: memref<16x32xf32, #tpu.memory_space<vmem>>, %arg8: memref<32x96xf32, #tpu.memory_space<vmem>>, %arg9: memref<32x128xf32, #tpu.memory_space<vmem>>, %arg10: memref<4x128xf32, #tpu.memory_space<vmem>>, %arg11: memref<1x8x128xf32, #tpu.memory_space<vmem>>, %arg12: memref<8x32xf32, #tpu.memory_space<vmem>>) attributes {dimension_semantics = [#tpu.dimension_semantics<arbitrary>], iteration_bounds = array<i64: 6>, scalar_prefetch = 0 : i64, scratch_operands = 0 : i64, tpu.core_type = #tpu.core_type<tc>, window_params = [{pipeline_mode = #tpu.pipeline_mode<synchronous>, transform_indices = @transform_0, window_bounds = array<i64: 6, 8, 1>}, {pipeline_mode = #tpu.pipeline_mode<synchronous>, transform_indices = @transform_1, window_bounds = array<i64: 8, 32>}, {pipeline_mode = #tpu.pipeline_mode<synchronous>, transform_indices = @transform_2, window_bounds = array<i64: 8, 8, 16>}, {pipeline_mode = #tpu.pipeline_mode<synchronous>, transform_indices = @transform_3, window_bounds = array<i64: 128, 32>}, {pipeline_mode = #tpu.pipeline_mode<synchronous>, transform_indices = @transform_4, window_bounds = array<i64: 32, 40>}, {pipeline_mode = #tpu.pipeline_mode<synchronous>, transform_indices = @transform_5, window_bounds = array<i64: 32, 104>}, {pipeline_mode = #tpu.pipeline_mode<synchronous>, transform_indices = @transform_6, window_bounds = array<i64: 16, 32>}, {pipeline_mode = #tpu.pipeline_mode<synchronous>, transform_indices = @transform_7, window_bounds = array<i64: 32, 96>}, {pipeline_mode = #tpu.pipeline_mode<synchronous>, transform_indices = @transform_8, window_bounds = array<i64: 32, 128>}, {pipeline_mode = #tpu.pipeline_mode<synchronous>, transform_indices = @transform_9, window_bounds = array<i64: 4, 128>}, {transform_indices = @transform_10, window_bounds = array<i64: 1, 8, 128>}, {pipeline_mode = #tpu.pipeline_mode<synchronous>, transform_indices = @transform_11, window_bounds = array<i64: 8, 32>}]} {
    %c0_i32 = arith.constant 0 : i32
    %0 = arith.cmpi eq, %arg0, %c0_i32 : i32
    %1 = arith.extui %0 : i1 to i32
    %c0_i32_0 = arith.constant 0 : i32
    %2 = arith.cmpi ne, %1, %c0_i32_0 : i32
    scf.if %2 {
      %c0_42 = arith.constant 0 : index
      %c0_43 = arith.constant 0 : index
      %91 = vector.load %arg2[%c0_42, %c0_43] : memref<8x32xf32, #tpu.memory_space<vmem>>, vector<8x32xf32>
      %c0_44 = arith.constant 0 : index
      %c0_45 = arith.constant 0 : index
      %92 = vector.load %arg12[%c0_44, %c0_45] : memref<8x32xf32, #tpu.memory_space<vmem>>, vector<8x32xf32>
      tpu.vector_store %arg12[%c0_44, %c0_45], %91 {strides = array<i32>} : memref<8x32xf32, #tpu.memory_space<vmem>>, vector<8x32xf32>,
    } else {
    }
    %c0 = arith.constant 0 : index
    %c0_1 = arith.constant 0 : index
    %3 = vector.load %arg12[%c0, %c0_1] : memref<8x32xf32, #tpu.memory_space<vmem>>, vector<8x32xf32>
    %4 = arith.index_cast %arg0 : i32 to index
    %c0_2 = arith.constant 0 : index
    %c0_3 = arith.constant 0 : index
    %5 = vector.load %arg1[%4, %c0_2, %c0_3] : memref<6x8x1xi32, #tpu.memory_space<vmem>>, vector<1x8x1xi32>
    %6 = vector.shape_cast %5 : vector<1x8x1xi32> to vector<8x1xi32>
    %7 = tpu.iota {dimensions = array<i32: 1>} : vector<8x128xi32>
    %8 = vector.broadcast %6 : vector<8x1xi32> to vector<8x128xi32>
    %9 = arith.cmpi eq, %7, %8 : vector<8x128xi32>
    %10 = arith.extui %9 : vector<8x128xi1> to vector<8x128xi32>
    %11 = arith.sitofp %10 : vector<8x128xi32> to vector<8x128xf32>
    %c0_4 = arith.constant 0 : index
    %c0_5 = arith.constant 0 : index
    %12 = vector.load %arg4[%c0_4, %c0_5] : memref<128x32xf32, #tpu.memory_space<vmem>>, vector<128x32xf32>
    %cst = arith.constant dense<0.000000e+00> : vector<8x32xf32>
    %13 = tpu.matmul %11, %12, %cst {dimension_numbers = #tpu.dot_dimension_numbers<[1], [0], [0], [1], [0, 0, 1, 1], [], []>} : vector<8x128xf32>, vector<128x32xf32>, vector<8x32xf32> -> vector<8x32xf32>
    %c0_6 = arith.constant 0 : index
    %c0_7 = arith.constant 0 : index
    %14 = vector.load %arg6[%c0_6, %c0_7] : memref<32x104xf32, #tpu.memory_space<vmem>>, vector<32x104xf32>
    %cst_8 = arith.constant dense<0.000000e+00> : vector<8x104xf32>
    %15 = tpu.matmul %3, %14, %cst_8 {dimension_numbers = #tpu.dot_dimension_numbers<[1], [0], [0], [1], [0, 0, 1, 1], [], []>} : vector<8x32xf32>, vector<32x104xf32>, vector<8x104xf32> -> vector<8x104xf32>
    %c0_9 = arith.constant 0 : index
    %c0_10 = arith.constant 0 : index
    %16 = vector.load %arg10[%c0_9, %c0_10] : memref<4x128xf32, #tpu.memory_space<vmem>>, vector<1x104xf32>
    %17 = vector.broadcast %16 : vector<1x104xf32> to vector<8x104xf32>
    %18 = arith.addf %15, %17 : vector<8x104xf32>
    %c0_11 = arith.constant 0 : index
    %c0_12 = arith.constant 0 : index
    %19 = vector.load %arg5[%c0_11, %c0_12] : memref<32x40xf32, #tpu.memory_space<vmem>>, vector<32x40xf32>
    %cst_13 = arith.constant dense<0.000000e+00> : vector<8x40xf32>
    %20 = tpu.matmul %13, %19, %cst_13 {dimension_numbers = #tpu.dot_dimension_numbers<[1], [0], [0], [1], [0, 0, 1, 1], [], []>} : vector<8x32xf32>, vector<32x40xf32>, vector<8x40xf32> -> vector<8x40xf32>
    %21 = vector.extract_strided_slice %20 {offsets = [0, 32], sizes = [8, 8], strides = [1, 1]} : vector<8x40xf32> to vector<8x8xf32>
    %22 = vector.extract_strided_slice %18 {offsets = [0, 96], sizes = [8, 8], strides = [1, 1]} : vector<8x104xf32> to vector<8x8xf32>
    %23 = arith.addf %21, %22 : vector<8x8xf32>
    %cst_14 = arith.constant dense<0xFF800000> : vector<8xf32>
    %24 = vector.multi_reduction <maximumf>, %23, %cst_14 [1] : vector<8x8xf32> to vector<8xf32>
    %25 = vector.shape_cast %24 : vector<8xf32> to vector<8x1xf32>
    %26 = vector.broadcast %25 : vector<8x1xf32> to vector<8x8xf32>
    %27 = arith.subf %23, %26 : vector<8x8xf32>
    %28 = math.exp %27 : vector<8x8xf32>
    %cst_15 = arith.constant dense<0.000000e+00> : vector<8xf32>
    %29 = vector.multi_reduction <add>, %28, %cst_15 [1] : vector<8x8xf32> to vector<8xf32>
    %30 = vector.shape_cast %29 : vector<8xf32> to vector<8x1xf32>
    %31 = vector.broadcast %30 : vector<8x1xf32> to vector<8x8xf32>
    %32 = arith.divf %28, %31 : vector<8x8xf32>
    %33 = vector.shape_cast %32 : vector<8x8xf32> to vector<8x8x1xf32>
    %c0_16 = arith.constant 0 : index
    %c0_17 = arith.constant 0 : index
    %c0_18 = arith.constant 0 : index
    %34 = vector.load %arg3[%c0_16, %c0_17, %c0_18] : memref<8x8x16xf32, #tpu.memory_space<vmem>>, vector<8x8x16xf32>
    %35 = vector.broadcast %33 : vector<8x8x1xf32> to vector<8x8x16xf32>
    %36 = arith.mulf %35, %34 : vector<8x8x16xf32>
    %cst_19 = arith.constant dense<0.000000e+00> : vector<8x16xf32>
    %37 = vector.multi_reduction <add>, %36, %cst_19 [1] : vector<8x8x16xf32> to vector<8x16xf32>
    %38 = vector.extract_strided_slice %20 {offsets = [0, 0], sizes = [8, 32], strides = [1, 1]} : vector<8x40xf32> to vector<8x32xf32>
    %c0_20 = arith.constant 0 : index
    %c0_21 = arith.constant 0 : index
    %39 = vector.load %arg7[%c0_20, %c0_21] : memref<16x32xf32, #tpu.memory_space<vmem>>, vector<16x32xf32>
    %cst_22 = arith.constant dense<0.000000e+00> : vector<8x32xf32>
    %40 = tpu.matmul %37, %39, %cst_22 {dimension_numbers = #tpu.dot_dimension_numbers<[1], [0], [0], [1], [0, 0, 1, 1], [], []>} : vector<8x16xf32>, vector<16x32xf32>, vector<8x32xf32> -> vector<8x32xf32>
    %41 = arith.addf %38, %40 : vector<8x32xf32>
    %c2 = arith.constant 2 : index
    %c0_23 = arith.constant 0 : index
    %42 = vector.load %arg10[%c2, %c0_23] : memref<4x128xf32, #tpu.memory_space<vmem>>, vector<1x32xf32>
    %43 = vector.broadcast %42 : vector<1x32xf32> to vector<8x32xf32>
    %44 = arith.addf %41, %43 : vector<8x32xf32>
    %cst_24 = arith.constant 0.000000e+00 : f32
    %45 = vector.broadcast %cst_24 : f32 to vector<8x32xf32>
    %46 = arith.maximumf %44, %45 : vector<8x32xf32>
    %c0_25 = arith.constant 0 : index
    %c0_26 = arith.constant 0 : index
    %47 = vector.load %arg8[%c0_25, %c0_26] : memref<32x96xf32, #tpu.memory_space<vmem>>, vector<32x96xf32>
    %cst_27 = arith.constant dense<0.000000e+00> : vector<8x96xf32>
    %48 = tpu.matmul %46, %47, %cst_27 {dimension_numbers = #tpu.dot_dimension_numbers<[1], [0], [0], [1], [0, 0, 1, 1], [], []>} : vector<8x32xf32>, vector<32x96xf32>, vector<8x96xf32> -> vector<8x96xf32>
    %c1 = arith.constant 1 : index
    %c0_28 = arith.constant 0 : index
    %49 = vector.load %arg10[%c1, %c0_28] : memref<4x128xf32, #tpu.memory_space<vmem>>, vector<1x96xf32>
    %50 = vector.broadcast %49 : vector<1x96xf32> to vector<8x96xf32>
    %51 = arith.addf %48, %50 : vector<8x96xf32>
    %52 = vector.extract_strided_slice %51 {offsets = [0, 0], sizes = [8, 64], strides = [1, 1]} : vector<8x96xf32> to vector<8x64xf32>
    %53 = vector.extract_strided_slice %18 {offsets = [0, 0], sizes = [8, 64], strides = [1, 1]} : vector<8x104xf32> to vector<8x64xf32>
    %54 = arith.addf %52, %53 : vector<8x64xf32>
    %55 = arith.negf %54 : vector<8x64xf32>
    %56 = math.exp %55 : vector<8x64xf32>
    %cst_29 = arith.constant 1.000000e+00 : f32
    %57 = vector.broadcast %cst_29 : f32 to vector<8x64xf32>
    %58 = arith.addf %57, %56 : vector<8x64xf32>
    %59 = arith.divf %57, %58 : vector<8x64xf32>
    %60 = vector.extract_strided_slice %59 {offsets = [0, 0], sizes = [8, 32], strides = [1, 1]} : vector<8x64xf32> to vector<8x32xf32>
    %61 = vector.extract_strided_slice %59 {offsets = [0, 32], sizes = [8, 32], strides = [1, 1]} : vector<8x64xf32> to vector<8x32xf32>
    %62 = vector.extract_strided_slice %51 {offsets = [0, 64], sizes = [8, 32], strides = [1, 1]} : vector<8x96xf32> to vector<8x32xf32>
    %63 = vector.extract_strided_slice %18 {offsets = [0, 64], sizes = [8, 32], strides = [1, 1]} : vector<8x104xf32> to vector<8x32xf32>
    %64 = arith.mulf %60, %63 : vector<8x32xf32>
    %65 = arith.addf %62, %64 : vector<8x32xf32>
    %66 = math.tanh %65 : vector<8x32xf32>
    %cst_30 = arith.constant 1.000000e+00 : f32
    %67 = vector.broadcast %cst_30 : f32 to vector<8x32xf32>
    %68 = arith.subf %67, %61 : vector<8x32xf32>
    %69 = arith.mulf %68, %66 : vector<8x32xf32>
    %70 = arith.mulf %61, %3 : vector<8x32xf32>
    %71 = arith.addf %69, %70 : vector<8x32xf32>
    %c0_31 = arith.constant 0 : index
    %c0_32 = arith.constant 0 : index
    %72 = vector.load %arg9[%c0_31, %c0_32] : memref<32x128xf32, #tpu.memory_space<vmem>>, vector<32x128xf32>
    %cst_33 = arith.constant dense<0.000000e+00> : vector<8x128xf32>
    %73 = tpu.matmul %71, %72, %cst_33 {dimension_numbers = #tpu.dot_dimension_numbers<[1], [0], [0], [1], [0, 0, 1, 1], [], []>} : vector<8x32xf32>, vector<32x128xf32>, vector<8x128xf32> -> vector<8x128xf32>
    %c3 = arith.constant 3 : index
    %c0_34 = arith.constant 0 : index
    %74 = vector.load %arg10[%c3, %c0_34] : memref<4x128xf32, #tpu.memory_space<vmem>>, vector<1x128xf32>
    %75 = vector.broadcast %74 : vector<1x128xf32> to vector<8x128xf32>
    %76 = arith.addf %73, %75 : vector<8x128xf32>
    %cst_35 = arith.constant dense<0xFF800000> : vector<8xf32>
    %77 = vector.multi_reduction <maximumf>, %76, %cst_35 [1] : vector<8x128xf32> to vector<8xf32>
    %78 = vector.shape_cast %77 : vector<8xf32> to vector<8x1xf32>
    %79 = vector.broadcast %78 : vector<8x1xf32> to vector<8x128xf32>
    %80 = arith.subf %76, %79 : vector<8x128xf32>
    %81 = math.exp %80 : vector<8x128xf32>
    %cst_36 = arith.constant dense<0.000000e+00> : vector<8xf32>
    %82 = vector.multi_reduction <add>, %81, %cst_36 [1] : vector<8x128xf32> to vector<8xf32>
    %83 = vector.shape_cast %82 : vector<8xf32> to vector<8x1xf32>
    %84 = math.log %83 : vector<8x1xf32>
    %85 = vector.broadcast %84 : vector<8x1xf32> to vector<8x128xf32>
    %86 = arith.subf %80, %85 : vector<8x128xf32>
    %c0_37 = arith.constant 0 : index
    %c0_38 = arith.constant 0 : index
    %c0_39 = arith.constant 0 : index
    %87 = vector.load %arg11[%c0_37, %c0_38, %c0_39] : memref<1x8x128xf32, #tpu.memory_space<vmem>>, vector<1x8x128xf32>
    %88 = vector.shape_cast %87 : vector<1x8x128xf32> to vector<8x128xf32>
    %89 = vector.shape_cast %86 : vector<8x128xf32> to vector<1x8x128xf32>
    tpu.vector_store %arg11[%c0_37, %c0_38, %c0_39], %89 {strides = array<i32>} : memref<1x8x128xf32, #tpu.memory_space<vmem>>, vector<1x8x128xf32>,
    %c0_40 = arith.constant 0 : index
    %c0_41 = arith.constant 0 : index
    %90 = vector.load %arg12[%c0_40, %c0_41] : memref<8x32xf32, #tpu.memory_space<vmem>>, vector<8x32xf32>
    tpu.vector_store %arg12[%c0_40, %c0_41], %71 {strides = array<i32>} : memref<8x32xf32, #tpu.memory_space<vmem>>, vector<8x32xf32>,
    return
  }
  func.func @transform_0(%arg0: i32) -> (i32, i32, i32) {
    %c0_i32 = arith.constant 0 : i32
    %c0_i32_0 = arith.constant 0 : i32
    %c0_i32_1 = arith.constant 0 : i32
    %c0_i32_2 = arith.constant 0 : i32
    return %c0_i32, %c0_i32_0, %c0_i32_1 : i32, i32, i32
  }
  func.func @transform_1(%arg0: i32) -> (i32, i32) {
    %c0_i32 = arith.constant 0 : i32
    %c0_i32_0 = arith.constant 0 : i32
    %c0_i32_1 = arith.constant 0 : i32
    return %c0_i32, %c0_i32_0 : i32, i32
  }
  func.func @transform_2(%arg0: i32) -> (i32, i32, i32) {
    %c0_i32 = arith.constant 0 : i32
    %c0_i32_0 = arith.constant 0 : i32
    %c0_i32_1 = arith.constant 0 : i32
    %c0_i32_2 = arith.constant 0 : i32
    return %c0_i32, %c0_i32_0, %c0_i32_1 : i32, i32, i32
  }
  func.func @transform_3(%arg0: i32) -> (i32, i32) {
    %c0_i32 = arith.constant 0 : i32
    %c0_i32_0 = arith.constant 0 : i32
    %c0_i32_1 = arith.constant 0 : i32
    return %c0_i32, %c0_i32_0 : i32, i32
  }
  func.func @transform_4(%arg0: i32) -> (i32, i32) {
    %c0_i32 = arith.constant 0 : i32
    %c0_i32_0 = arith.constant 0 : i32
    %c0_i32_1 = arith.constant 0 : i32
    return %c0_i32, %c0_i32_0 : i32, i32
  }
  func.func @transform_5(%arg0: i32) -> (i32, i32) {
    %c0_i32 = arith.constant 0 : i32
    %c0_i32_0 = arith.constant 0 : i32
    %c0_i32_1 = arith.constant 0 : i32
    return %c0_i32, %c0_i32_0 : i32, i32
  }
  func.func @transform_6(%arg0: i32) -> (i32, i32) {
    %c0_i32 = arith.constant 0 : i32
    %c0_i32_0 = arith.constant 0 : i32
    %c0_i32_1 = arith.constant 0 : i32
    return %c0_i32, %c0_i32_0 : i32, i32
  }
  func.func @transform_7(%arg0: i32) -> (i32, i32) {
    %c0_i32 = arith.constant 0 : i32
    %c0_i32_0 = arith.constant 0 : i32
    %c0_i32_1 = arith.constant 0 : i32
    return %c0_i32, %c0_i32_0 : i32, i32
  }
  func.func @transform_8(%arg0: i32) -> (i32, i32) {
    %c0_i32 = arith.constant 0 : i32
    %c0_i32_0 = arith.constant 0 : i32
    %c0_i32_1 = arith.constant 0 : i32
    return %c0_i32, %c0_i32_0 : i32, i32
  }
  func.func @transform_9(%arg0: i32) -> (i32, i32) {
    %c0_i32 = arith.constant 0 : i32
    %c0_i32_0 = arith.constant 0 : i32
    %c0_i32_1 = arith.constant 0 : i32
    return %c0_i32, %c0_i32_0 : i32, i32
  }
  func.func @transform_10(%arg0: i32) -> (i32, i32, i32) {
    %c0_i32 = arith.constant 0 : i32
    %c0_i32_0 = arith.constant 0 : i32
    %c0_i32_1 = arith.constant 0 : i32
    return %arg0, %c0_i32, %c0_i32_0 : i32, i32, i32
  }
  func.func @transform_11(%arg0: i32) -> (i32, i32) {
    %c0_i32 = arith.constant 0 : i32
    %c0_i32_0 = arith.constant 0 : i32
    %c0_i32_1 = arith.constant 0 : i32
    return %c0_i32, %c0_i32_0 : i32, i32
  }
}

</mosaic_0001>

<bundles_post_ra>
// kernel: attn_decoder_forward_seq.1
= control target key start
LH: loop header
LB: loop body
LE: loop exit
PB: predicated region body
PF: predicated region fallthrough
CT: control target
= control target key end

     0   :  { %17 = vsyncpa [#allocation3], 0  ;;  %s2153_s0 = inlined_call_operand.vmem [shape: s32[6,8,1], index: 0, kind: input, shape index: {}]   ;;  %s2154_s1 = inlined_call_operand.hbm [shape: f32[8,32], index: 1, kind: input, shape index: {}]   ;;  %s2155_s2 = inlined_call_operand.vmem [shape: f32[8,8,16], index: 2, kind: input, shape index: {}]   ;;  %s2156_s3 = inlined_call_operand.vmem [shape: f32[128,32], index: 3, kind: input, shape index: {}]   ;;  %s2157_s4 = inlined_call_operand.vmem [shape: f32[32,40], index: 4, kind: input, shape index: {}]   ;;  %s2158_s5 = inlined_call_operand.vmem [shape: f32[32,104], index: 5, kind: input, shape index: {}]   ;;  %s2159_s6 = inlined_call_operand.vmem [shape: f32[16,32], index: 6, kind: input, shape index: {}]   ;;  %s2160_s7 = inlined_call_operand.vmem [shape: f32[32,96], index: 7, kind: input, shape index: {}]   ;;  %s2161_s8 = inlined_call_operand.vmem [shape: f32[32,128], index: 8, kind: input, shape index: {}]   ;;  %s2162_s9 = inlined_call_operand.hbm [shape: f32[4,128], index: 9, kind: input, shape index: {}]   ;;  %s2163_s10 = inlined_call_operand.hbm [shape: f32[6,8,128], index: 10, kind: output, shape index: {0}]   ;;  %s2164_s11 = inlined_call_operand.hbm [shape: f32[8,32], index: 11, kind: output, shape index: {1}]  }
   0x1   :  { %18 = vsyncpa [#allocation6], 0 }
   0x2   :  { %19 = vsyncpa [#allocation4], 0 }
   0x3   :  { %21 = vsyncpa [#allocation4 + $0x1], 0 }
   0x4   :  { %22 = vsyncpa [#allocation9], 0  ;;  %s1754_s17 = smov 0   ;;  %s1756_s18 = smov 0  }
   0x5   :  { %s1758_s19 = smov 0   ;;  %s1760_s20 = smov 0  }
   0x6 LB: > { %2172 = sst [smem:[#allocation14_spill]] %s1676_s19  ;;  %s1775_s21 = sadd.s32 4294967295, %s1680_s20   ;;  %s1680_s20 = sphi %s1760_s20, %s2192_s20   ;;  %s1676_s19 = sphi %s1758_s19, %s2194_s19   ;;  %s1672_s18 = sphi %s1756_s18, %s2196_s18   ;;  %s1668_s17 = sphi %s1754_s17, %s2195_s17  }
   0x7   : > { %s1229_s22 = sadd.s32 4294967294, %s1680_s20   ;;  %s1779_s23 = sadd.s32 1, %s1680_s20  }
   0x8   : > { %2173 = sst [smem:[#allocation15_spill]] %s1779_s23  ;;  %s245_s24 = sadd.s32 1, %s1676_s19 }
   0x9   : > { %s242_s25 = ssub.s32 %s1680_s20, %s1779_s23  ;;  %p255_p0 = scmp.ne.s32.totalorder %s1676_s19, %s1672_s18 }
   0xa   : > { %p243_p1 = scmp.eq.s32.totalorder %s242_s25, 0  ;;  %p2166_p2 = scmp.eq.s32.totalorder %s1775_s21, 5 }
   0xb   : > { %p261_p3 = scmp.ne.s32.totalorder %s1672_s18, %s1668_s17  ;;  %p262_p4 = scmp.eq.s32.totalorder %s1229_s22, 5 }
   0xc   : > { %s1790_s26 = scalar_select %p243_p1, %s1676_s19, %s245_s24  }
   0xd   : > { %p1794_p5 = por %p2166_p2, %p255_p0  ;;  %p1798_p6 = por %p262_p4, %p261_p3 }
   0xe   : > { %2174 = sst [smem:[#allocation16_spill]] %s1790_s26  ;;  %p1230_p7 = scmp.ge.s32.totalorder %s1680_s20, 1 }
   0xf   : > { %s2175_s27 = scalar_select %p1794_p5, 1, 0 }
  0x10   : > { %s2176_s28 = scalar_select %p1798_p6, 1, 0 }
  0x11   : > { %p290_p8 = scmp.lt.s32.totalorder %s1680_s20, 7  ;;  %p2167_p10 = scmp.eq.s32.totalorder %s1775_s21, 0 }
  0x12   : > { %s1682_s30 = smov [#allocation2]   ;;  %s1683_s13 = smov [#allocation5]  }
  0x13   : > { %p1806_p11 = pnand %p1230_p7, %p290_p8  ;;  %s306_s12 = sshll.u32 %s1682_s30, 4  ;;  %s307_s12 = int_to_ptr.vmem [resolvable:$true] %s306_s12 }
  0x14   : > { %s338_s14 = sshll.u32 %s1683_s13, 4  ;;  %s1524_s24 = scalar_lea.hbm %s2154_s1, 128  ;;  %s1818_s14 = int_to_ptr.vmem [resolvable:$true] %s338_s14 }
  0x15   : > { %s2177_s29 = scalar_select %p1806_p11, 1, 0 }
  0x16   : > { %p1448_p12 = pneg %p1806_p11  ;;  %p1525_p0 = scmp.ne.s32.totalorder %s2154_s1, %s1524_s24 }
  0x17   : > { %p1531_p7 = scmp.lt.u32.totalorder %s1524_s24, %s2154_s1 }
  0x18   : > { %p1814_p13 = pnand %p2167_p10, %p1448_p12 }
  0x1a   : > { %p1526_p1 = pneg %p1814_p13 }
  0x1c   : > { %p1527_p3 = pnand %p1526_p1, %p1525_p0 }
  0x1e   : > { %p1528_p4 = pneg %p1527_p3 }
  0x20   : > { %p1533_p8 = pnand %p1531_p7, %p1528_p4 }
  0x22   : > { %1536 = shalt.err (!%p1533_p8)
}
  0x23   : > { %s1537_s19 = scalar_lea.vmem %s307_s12, 128  ;;  %p1545_p10 = scmp.lt.s32.totalorder %s307_s12, %s307_s12 }
  0x24   : > { %p1538_p12 = scmp.ne.s32.totalorder %s307_s12, %s1537_s19  ;;  %p1546_p6 = scmp.lt.s32.totalorder %s1537_s19, %s1537_s19 }
  0x26   : > { %p1540_p2 = pnand %p1538_p12, %p1526_p1  ;;  %p1547_p5 = por %p1546_p6, %p1545_p10 }
  0x28   : > { %p1541_p9 = pneg %p1540_p2 }
  0x2a   : > { %p1548_p11 = pnand %p1547_p5, %p1541_p9 }
  0x2c   : > { %1551 = shalt.err (!%p1548_p11)
}
  0x2d   : > { %1451 = dma.hbm_to_vmem [thread:$0]  (!%p1814_p13), %s2154_s1, 128, %s307_s12, [#allocation3]  }
  0x2e   : > { %s1552_s25 = scalar_lea.hbm %s2162_s9, 64 }
  0x2f   : > { %p1553_p2 = scmp.ne.s32.totalorder %s2162_s9, %s1552_s25  ;;  %p1559_p9 = scmp.lt.u32.totalorder %s1552_s25, %s2162_s9 }
  0x31   : > { %p1555_p6 = pnand %p1553_p2, %p1526_p1 }
  0x33   : > { %p1556_p5 = pneg %p1555_p6 }
  0x35   : > { %p1561_p10 = pnand %p1559_p9, %p1556_p5 }
  0x37   : > { %1564 = shalt.err (!%p1561_p10)
}
  0x38   : > { %s1565_s12 = scalar_lea.vmem %s1818_s14, 64  ;;  %p1573_p4 = scmp.lt.s32.totalorder %s1818_s14, %s1818_s14 }
  0x39   : > { %p1566_p11 = scmp.ne.s32.totalorder %s1818_s14, %s1565_s12  ;;  %p1574_p7 = scmp.lt.s32.totalorder %s1565_s12, %s1565_s12 }
  0x3b   : > { %p1568_p0 = pnand %p1566_p11, %p1526_p1  ;;  %p1575_p8 = por %p1574_p7, %p1573_p4 }
  0x3d   : > { %p1569_p3 = pneg %p1568_p0 }
  0x3f   : > { %p1576_p12 = pnand %p1575_p8, %p1569_p3 }
  0x41   : > { %1579 = shalt.err (!%p1576_p12)
}
  0x42   : > { %1454 = dma.hbm_to_vmem [thread:$0]  (!%p1814_p13), %s2162_s9, 64, %s1818_s14, [#allocation6]  }
  0x43   : > { %p2179_p2 = scmp.ne.s32.totalorder %s2177_s29, 0 }
  0x44   : > { %p2180_p6 = scmp.eq.s32.totalorder (!%p2179_p2), %s1775_s21, 0 }
  0x45   : > { %351 = sbr.rel (%p2179_p2) target bundleno = 2609 (0xa31), region = 60 }
  0x4c   : > { %1651 = dma.done.wait (%p2180_p6), [#allocation3], 128   ;;  %p2181_p1 = pmov %p2180_p6 }
  0x4e   : > { %1653 = vsyncadd (%p2181_p1), [#allocation3], 4294967168  ;;  %p2182_p5 = pmov %p2181_p1 }
  0x4f   : > { %p2183_p9 = pmov %p2181_p1 }
  0x50   : > { %1655 = dma.done.wait (%p2182_p5), [#allocation6], 64  }
  0x51   : > { %1657 = vsyncadd (%p2183_p9), [#allocation6], 4294967232  ;;  %s385_s15 = sand.u32 1, %s1672_s18   ;;  %p2184_p13 = scmp.ne.s32.totalorder %s1775_s21, 0 }
  0x52   : > { %s1880_s14 = sshll.u32 %s385_s15, 3  ;;  %v394_v0 = vld [vmem:[#allocation2] sm:$0xff] (!%p2184_p13)  ;;  %vm395_vm0 = vcmask (!%p2184_p13), 261120  }
  0x53   : > { %s387_s29 = scalar_lea.vmem [#allocation7], %s1880_s14  ;;  %393 = sbr.rel (%p2184_p13) target bundleno = 90 (0x5a), region = 72  ;;  %396 = vst.msk [vmem:[#allocation8] sm:$0xff] (!%p2184_p13), %vm395_vm0, %v394_v0 }
  0x5a PF: > { %s1238_s22 = sshll.u32 %s1775_s21, 3  ;;  %v409_v1 = vld [vmem:[%s2156_s3] sm:$0xff]  ;;  %v410_v2 = vld [vmem:[%s2156_s3 + $0x8] sm:$0xff]  ;;  %v411_v3 = vld [vmem:[%s2156_s3 + $0x10] sm:$0xff]  ;;  %v1684_v4 = vmov 0   ;;  %v1685_v5 = vmov 0.0|0.0   ;;  %v401_v42 = vlaneseq }
  0x5b   : > { %1509 = vset.pattern.permute.xlu0 %v1684_v4  ;;  %s399_s16 = scalar_lea.vmem %s2153_s0, %s1238_s22  ;;  %1383 = vmatprep.subr.bf16.mxu0 %v1685_v5  ;;  %v1384_v6 = vpack.c.bf16 %v410_v2, %v409_v1  ;;  %v412_v7 = vld [vmem:[%s2156_s3 + $0x18] sm:$0xff]  ;;  %v413_v10 = vld [vmem:[%s2156_s3 + $0x20] sm:$0xff]  ;;  %v414_v11 = vld [vmem:[%s2156_s3 + $0x28] sm:$0xff]  ;;  %vm1686_vm1 = vmmov 0   ;;  %v1687_v12 = vmov 0.0   ;;  %vm504_vm2 = vcmask 261120  }
  0x5c   : > { %v400_v8 = vld [vmem:[%s399_s16] sm:$0xff]  ;;  %1407 = vmatprep.subr.bf16.mxu1 %v1685_v5  ;;  %v1387_v9 = vpack.c.bf16 %v412_v7, %v411_v3  ;;  %1329 = vmatprep.mubr.msk.f32.mxu0 %vm1686_vm1, %v1687_v12  ;;  %v496_v14 = vld [vmem:[%s2158_s5 + $0x8] sm:$0xff]  ;;  %v497_v15 = vld [vmem:[%s2158_s5 + $0x10] sm:$0xff]  ;;  %v1390_v17 = vpack.c.bf16 %v414_v11, %v413_v10  ;;  %v402_v43 = vand.u32 127, %v401_v42  ;;  %v1688_v45 = vmov 1.0   ;;  %s1689_s25 = smov 64  }
  0x5d   : > { %404 = vperm.xlu0 %1509, %v400_v8   ;;  %1385 = vmatpush3.bf16.msra.mxu0 %v1384_v6  ;;  %v495_v13 = vld [vmem:[%s2158_s5] sm:$0xff]  ;;  %v498_v16 = vld [vmem:[%s2158_s5 + $0x18] sm:$0xff]  ;;  %v415_v19 = vld [vmem:[%s2156_s3 + $0x30] sm:$0xff]  ;;  %vm660_vm4 = vcmask 326912   ;;  %s1690_s30 = smov 96   ;;  %vm671_vm5 = vcmask 64512  }
  0x5e   : > { %1386 = vmatprep.subr.bf16.mxu0 %v1685_v5  ;;  %1340 = vmatprep.mubr.msk.f32.mxu1 %vm1686_vm1, %v1687_v12  ;;  %v1408_v18 = vpack.c.bf16 %v496_v14, %v495_v13  ;;  %v416_v20 = vld [vmem:[%s2156_s3 + $0x38] sm:$0xff]  ;;  %v1411_v21 = vpack.c.bf16 %v498_v16, %v497_v15  ;;  %v578_v22 = vld [vmem:[%s2157_s4] sm:$0xff]  ;;  %v579_v23 = vld [vmem:[%s2157_s4 + $0x8] sm:$0xff]  ;;  %v678_v0 = vshrl.u32 %v401_v42, 7  ;;  %vm757_vm6 = vcmask 130048   ;;  %s1692_s23 = smov [#allocation8]  }
  0x5f   : > { %v1393_v24 = vpack.c.bf16 %v416_v20, %v415_v19  ;;  %v417_v25 = vld [vmem:[%s2156_s3 + $0x40] sm:$0xff]  ;;  %v418_v26 = vld [vmem:[%s2156_s3 + $0x48] sm:$0xff]  ;;  %v1414_v28 = vpack.c.bf16 %v579_v23, %v578_v22  ;;  %v580_v29 = vld [vmem:[%s2157_s4 + $0x10] sm:$0xff]  ;;  %vm824_vm7 = vcmask 1041409   ;;  %vm826_vm8 = vcmask 1042434   ;;  %s1147_s16 = sshll.u32 %s1692_s23, 4  ;;  %s1148_s16 = int_to_ptr.vmem [resolvable:$true] %s1147_s16 }
  0x60   : > { %1409 = vmatpush3.bf16.msra.mxu1 %v1408_v18  ;;  %v1947_v27 = vld [vmem:[#allocation8] sm:$0xff]  ;;  %v1396_v31 = vpack.c.bf16 %v418_v26, %v417_v25  ;;  %v419_v32 = vld [vmem:[%s2156_s3 + $0x50] sm:$0xff]  ;;  %v422_v37 = vld [vmem:[%s2156_s3 + $0x68] sm:$0xff]  ;;  %v719_v1 = vsub.s32 5, %v678_v0  ;;  %v679_v2 = vsub.s32 0, %v678_v0  ;;  %v687_v8 = vsub.s32 1, %v678_v0  ;;  %p1587_p4 = scmp.lt.s32.totalorder %s1148_s16, %s1148_s16 }
  0x61   : > { %1388 = vmatpush3.bf16.msra.mxu0 %v1387_v9  ;;  %1410 = vmatprep.subr.bf16.mxu1 %v1685_v5  ;;  %v581_v30 = vld [vmem:[%s2157_s4 + $0x18] sm:$0xff]  ;;  %v421_v36 = vld [vmem:[%s2156_s3 + $0x60] sm:$0xff]  ;;  %v423_v39 = vld [vmem:[%s2156_s3 + $0x70] sm:$0xff]  ;;  %v695_v10 = vsub.s32 2, %v678_v0  ;;  %v703_v13 = vsub.s32 3, %v678_v0  ;;  %v711_v15 = vsub.s32 4, %v678_v0 }
  0x62   : > { %1389 = vmatprep.subr.bf16.mxu0 %v1685_v5  ;;  %v420_v33 = vld [vmem:[%s2156_s3 + $0x58] sm:$0xff]  ;;  %v1417_v34 = vpack.c.bf16 %v581_v30, %v580_v29  ;;  %v1402_v38 = vpack.c.bf16 %v422_v37, %v421_v36  ;;  %v1241_v46 = vld [vmem:[#allocation5] ss:$0 sm:$0xff]  ;;  %v735_v19 = vsub.s32 7, %v678_v0  ;;  %vm828_vm9 = vcmask 1043459   ;;  %p2185_p11 = scmp.eq.s32.totalorder %s1775_s21, 5 }
  0x63   : > { %v1399_v35 = vpack.c.bf16 %v420_v33, %v419_v32  ;;  %v424_v40 = vld [vmem:[%s2156_s3 + $0x78] sm:$0xff]  ;;  %v815_v22 = vld [vmem:[%s2159_s6 + $0x8] sm:$0xff]  ;;  %v743_v33 = vld [vmem:[%s2155_s2 + $0x10] sm:$0xff]  ;;  %vm830_vm10 = vcmask 1044484   ;;  %vm832_vm11 = vcmask 1045509   ;;  %vm834_vm12 = vcmask 1046534  }
  0x64   : > { %1412 = vmatpush3.bf16.msra.mxu1 %v1411_v21  ;;  %v1405_v41 = vpack.c.bf16 %v424_v40, %v423_v39  ;;  %v814_v21 = vld [vmem:[%s2159_s6] sm:$0xff]  ;;  %v742_v26 = vld [vmem:[%s2155_s2 + $0x8] sm:$0xff]  ;;  %vm836_vm13 = vcmask 1047559  }
  0x65   : > { %1391 = vmatpush3.bf16.msra.mxu0 %v1390_v17  ;;  %1413 = vmatprep.subr.bf16.mxu1 %v1685_v5  ;;  %v727_v17 = vsub.s32 6, %v678_v0  ;;  %v1420_v23 = vpack.c.bf16 %v815_v22, %v814_v21  ;;  %v746_v30 = vld [vmem:[%s2155_s2 + $0x28] sm:$0xff] }
  0x66   : > { %1392 = vmatprep.subr.bf16.mxu0 %v1685_v5 }
  0x67   : > { %1341 = vmatmul.mubr.msk.f32.vlgmr.msra.gmra.mrb[0].mxu1 %vm504_vm2, %v1947_v27 }
  0x68   : > { %1415 = vmatpush3.bf16.msra.mxu1 %v1414_v28  ;;  %1351 = vmatprep.mubr.msk.f32.mxu1 %vm1686_vm1, %v1687_v12 }
  0x69   : > { %1394 = vmatpush3.bf16.msra.mxu0 %v1393_v24  ;;  %1416 = vmatprep.subr.bf16.mxu1 %v1685_v5  ;;  %v741_v24 = vld [vmem:[%s2155_s2] sm:$0xff] }
  0x6a   : > { %1395 = vmatprep.subr.bf16.mxu0 %v1685_v5 }
  0x6c   : > { %1418 = vmatpush3.bf16.msra.mxu1 %v1417_v34 }
  0x6d   : > { %1397 = vmatpush3.bf16.msra.mxu0 %v1396_v31  ;;  %1419 = vmatprep.subr.bf16.mxu1 %v1685_v5 }
  0x6e   : > { %1398 = vmatprep.subr.bf16.mxu0 %v1685_v5 }
  0x71   : > { %1400 = vmatpush3.bf16.msra.mxu0 %v1399_v35 }
  0x72   : > { %1401 = vmatprep.subr.bf16.mxu0 %v1685_v5 }
  0x75   : > { %1403 = vmatpush3.bf16.msra.mxu0 %v1402_v38 }
  0x76   : > { %1404 = vmatprep.subr.bf16.mxu0 %v1685_v5 }
  0x79   : > { %1406 = vmatpush3.bf16.msra.mxu0 %v1405_v41  ;;  %v744_v41 = vld [vmem:[%s2155_s2 + $0x18] sm:$0xff] }
  0xdc   : > { %v405_v44 = vpop.permute.xlu0 %404 }
  0xdd   : > { %vm406_vm3 = vcmp.eq.s32.totalorder %v402_v43, %v405_v44 }
  0xde   : > { %1330 = vmatmul.mubr.msk.f32.vlgmr.msra.gmra.mrb[0].mxu0 %vm406_vm3, %v1688_v45 }
 0x13a   : > { %v574_v47 = vpop.f32.mrb[0].mxu1 }
 0x13b   : > { %v1984_v48 = vadd.f32 %v1241_v46, %v574_v47  ;;  %v1342_v49 = vpop.f32.mrb[1].mxu1 }
 0x13d   : > { %656 = vrot.lane.b32.xlu0 %v1984_v48, %s1689_s25 }
 0x1af   : > { %v1991_v52 = vpop.permute.xlu0 %656 }
 0x1b1   : > { %v491_v50 = vpop.f32.mrb[0].mxu0 }
 0x1b2   : > { %v1331_v51 = vpop.f32.mrb[1].mxu0  ;;  %1352 = vmatmul.mubr.msk.f32.vlgmr.msra.gmra.mrb[2].mxu1 %vm504_vm2, %v491_v50 }
 0x1b3   : > { %1358 = vmatprep.mubr.msk.f32.mxu1 %vm1686_vm1, %v1687_v12  ;;  %1421 = vmatpush3.bf16.msra.mxu1 %v1420_v23  ;;  %v745_v51 = vld [vmem:[%s2155_s2 + $0x20] sm:$0xff] }
 0x1b4   : > { %1422 = vmatprep.subr.bf16.mxu1 %v1685_v5 }
 0x285   : > { %v1993_v53 = vpop.f32.mrb[2].mxu1 }
 0x286   : > { %v1353_v54 = vpop.f32.mrb[3].mxu1  ;;  %v659_v55 = vadd.f32 %v1991_v52, %v1993_v53 }
 0x288   : > { %v661_v56 = vsel %vm660_vm4, %v659_v55, -inf }
 0x289   : > { %662 = vmax.xlane.f32.xlu1 %v661_v56 }
 0x316   : > { %v663_v57 = vpop.xlane.xlu1 %662 }
 0x317   : > { %v664_v58 = vsub.f32 %v659_v55, %v663_v57 }
 0x319   : > { %v665_v59 = vmul.f32 1.442695, %v664_v58 }
 0x31b   : > { %1510 = vpow2.f32 %v665_v59 }
 0x325   : > { %v1511_v60 = vpop.eup %1510 }
 0x326   : > { %668 = vrot.lane.b32.xlu1 %v1511_v60, %s1690_s30 }
 0x398   : > { %v669_v61 = vpop.permute.xlu1 %668 }
 0x399   : > { %v672_v62 = vsel %vm671_vm5, %v669_v61, 0.0 }
 0x39a   : > { %673 = vadd.xlane.f32.xlu0 %v672_v62 }
 0x427   : > { %v674_v63 = vpop.xlane.xlu0 %673 }
 0x428   : > { %1512 = vrcp.f32 %v674_v63  ;;  %v747_v63 = vld [vmem:[%s2155_s2 + $0x30] sm:$0xff] }
 0x432   : > { %v1513_v3 = vpop.eup %1512 }
 0x433   : > { %v676_v4 = vmul.f32 %v1513_v3, %v1511_v60 }
 0x435   : > { %v720_v6 = vrot.slane %v676_v4, %v719_v1  ;;  %v680_v7 = vrot.slane %v676_v4, %v679_v2  ;;  %v688_v9 = vrot.slane %v676_v4, %v687_v8  ;;  %v696_v11 = vrot.slane %v676_v4, %v695_v10 }
 0x436   : > { %v704_v14 = vrot.slane %v676_v4, %v703_v13  ;;  %v712_v16 = vrot.slane %v676_v4, %v711_v15  ;;  %v728_v18 = vrot.slane %v676_v4, %v727_v17  ;;  %v736_v20 = vrot.slane %v676_v4, %v735_v19  ;;  %v748_v13 = vld [vmem:[%s2155_s2 + $0x38] sm:$0xff] }
 0x437   : > { %723 = vbcast.lane.b32.xlu0 %v720_v6, 288  ;;  %683 = vbcast.lane.b32.xlu1 %v680_v7, 288 }
 0x43b   : > { %691 = vbcast.lane.b32.xlu1 %v688_v9, 288 }
 0x43f   : > { %699 = vbcast.lane.b32.xlu1 %v696_v11, 288 }
 0x443   : > { %707 = vbcast.lane.b32.xlu1 %v704_v14, 288 }
 0x447   : > { %715 = vbcast.lane.b32.xlu1 %v712_v16, 288 }
 0x44b   : > { %731 = vbcast.lane.b32.xlu1 %v728_v18, 288 }
 0x44f   : > { %739 = vbcast.lane.b32.xlu1 %v736_v20, 288 }
 0x4a9   : > { %v684_v25 = vpop.permute.xlu1 %683  ;;  %v724_v31 = vpop.permute.xlu0 %723 }
 0x4aa   : > { %v749_v28 = vmul.f32 %v741_v24, %v684_v25  ;;  %v754_v36 = vmul.f32 %v746_v30, %v724_v31 }
 0x4ac   : > { %v758_v34 = vsel %vm757_vm6, %v749_v28, 0.0  ;;  %v793_v43 = vsel %vm757_vm6, %v754_v36, 0.0 }
 0x4ad   : > { %v692_v29 = vpop.permute.xlu1 %691  ;;  %v759_v40 = vrot.slane %v758_v34, 4  ;;  %v794_v54 = vrot.slane %v793_v43, 4 }
 0x4ae   : > { %v750_v32 = vmul.f32 %v742_v26, %v692_v29 }
 0x4af   : > { %v760_v49 = vadd.f32 %v759_v40, %v758_v34  ;;  %v795_v0 = vadd.f32 %v794_v54, %v793_v43 }
 0x4b0   : > { %v765_v35 = vsel %vm757_vm6, %v750_v32, 0.0 }
 0x4b1   : > { %v766_v37 = vrot.slane %v765_v35, 4  ;;  %v700_v38 = vpop.permute.xlu1 %699  ;;  %v761_v61 = vrot.slane %v760_v49, 2  ;;  %v796_v14 = vrot.slane %v795_v0, 2 }
 0x4b2   : > { %v751_v39 = vmul.f32 %v743_v33, %v700_v38 }
 0x4b3   : > { %v767_v44 = vadd.f32 %v766_v37, %v765_v35  ;;  %v762_v9 = vadd.f32 %v761_v61, %v760_v49  ;;  %v797_v26 = vadd.f32 %v796_v14, %v795_v0  ;;  %v921_v61 = vld [vmem:[%s2160_s7 + $0x18] sm:$0xff]  ;;  %v1245_v0 = vld [vmem:[#allocation5 + $0x2] ss:$0 sm:$0xff] }
 0x4b4   : > { %v772_v42 = vsel %vm757_vm6, %v751_v39, 0.0 }
 0x4b5   : > { %v773_v45 = vrot.slane %v772_v42, 4  ;;  %v708_v46 = vpop.permute.xlu1 %707  ;;  %v768_v56 = vrot.slane %v767_v44, 2  ;;  %v763_v22 = vrot.slane %v762_v9, 1  ;;  %v798_v39 = vrot.slane %v797_v26, 1 }
 0x4b6   : > { %v752_v47 = vmul.f32 %v744_v41, %v708_v46 }
 0x4b7   : > { %v774_v50 = vadd.f32 %v773_v45, %v772_v42  ;;  %v769_v2 = vadd.f32 %v768_v56, %v767_v44  ;;  %v764_v34 = vadd.f32 %v763_v22, %v762_v9  ;;  %v799_v49 = vadd.f32 %v798_v39, %v797_v26 }
 0x4b8   : > { %v779_v55 = vsel %vm757_vm6, %v752_v47, 0.0 }
 0x4b9   : > { %v780_v57 = vrot.slane %v779_v55, 4  ;;  %v716_v58 = vpop.permute.xlu1 %715  ;;  %v775_v59 = vrot.slane %v774_v50, 2  ;;  %v770_v16 = vrot.slane %v769_v2, 1 }
 0x4ba   : > { %v753_v60 = vmul.f32 %v745_v51, %v716_v58  ;;  %v919_v58 = vld [vmem:[%s2160_s7 + $0x8] sm:$0xff] }
 0x4bb   : > { %v781_v62 = vadd.f32 %v780_v57, %v779_v55  ;;  %v776_v7 = vadd.f32 %v775_v59, %v774_v50  ;;  %v771_v29 = vadd.f32 %v770_v16, %v769_v2  ;;  %v918_v57 = vld [vmem:[%s2160_s7] sm:$0xff] }
 0x4bc   : > { %v786_v1 = vsel %vm757_vm6, %v753_v60, 0.0  ;;  %v1423_v59 = vpack.c.bf16 %v919_v58, %v918_v57  ;;  %v920_v60 = vld [vmem:[%s2160_s7 + $0x10] sm:$0xff] }
 0x4bd   : > { %v782_v3 = vrot.slane %v781_v62, 2  ;;  %v787_v4 = vrot.slane %v786_v1, 4  ;;  %v732_v6 = vpop.permute.xlu1 %731  ;;  %v777_v20 = vrot.slane %v776_v7, 1  ;;  %v825_v40 = vsel %vm824_vm7, %v771_v29, %v764_v34 }
 0x4be   : > { %v755_v8 = vmul.f32 %v747_v63, %v732_v6  ;;  %v1246_v6 = vld [vmem:[#allocation5 + $0x1] ss:$0 sm:$0xff] }
 0x4bf   : > { %v783_v10 = vadd.f32 %v782_v3, %v781_v62  ;;  %v788_v11 = vadd.f32 %v787_v4, %v786_v1  ;;  %v778_v33 = vadd.f32 %v777_v20, %v776_v7  ;;  %v1426_v62 = vpack.c.bf16 %v921_v61, %v920_v60 }
 0x4c0   : > { %v800_v15 = vsel %vm757_vm6, %v755_v8, 0.0 }
 0x4c1   : > { %v789_v17 = vrot.slane %v788_v11, 2  ;;  %v801_v18 = vrot.slane %v800_v15, 4  ;;  %v740_v19 = vpop.permute.xlu1 %739  ;;  %v784_v23 = vrot.slane %v783_v10, 1  ;;  %v827_v43 = vsel %vm826_vm8, %v778_v33, %v825_v40 }
 0x4c2   : > { %v756_v21 = vmul.f32 %v748_v13, %v740_v19 }
 0x4c3   : > { %v790_v24 = vadd.f32 %v789_v17, %v788_v11  ;;  %v802_v25 = vadd.f32 %v801_v18, %v800_v15  ;;  %v785_v35 = vadd.f32 %v784_v23, %v783_v10  ;;  %v1027_v18 = vld [vmem:[%s2161_s8 + $0x10] sm:$0xff] }
 0x4c4   : > { %v807_v28 = vsel %vm757_vm6, %v756_v21, 0.0 }
 0x4c5   : > { %v791_v30 = vrot.slane %v790_v24, 1  ;;  %v803_v31 = vrot.slane %v802_v25, 2  ;;  %v808_v32 = vrot.slane %v807_v28, 4  ;;  %v829_v44 = vsel %vm828_vm9, %v785_v35, %v827_v43 }
 0x4c7   : > { %v804_v36 = vadd.f32 %v803_v31, %v802_v25  ;;  %v809_v37 = vadd.f32 %v808_v32, %v807_v28  ;;  %v792_v38 = vadd.f32 %v791_v30, %v790_v24 }
 0x4c9   : > { %v805_v41 = vrot.slane %v804_v36, 1  ;;  %v810_v42 = vrot.slane %v809_v37, 2  ;;  %v831_v46 = vsel %vm830_vm10, %v792_v38, %v829_v44 }
 0x4ca   : > { %v833_v54 = vsel %vm832_vm11, %v799_v49, %v831_v46 }
 0x4cb   : > { %v811_v45 = vadd.f32 %v810_v42, %v809_v37  ;;  %v806_v47 = vadd.f32 %v805_v41, %v804_v36 }
 0x4cd   : > { %v812_v50 = vrot.slane %v811_v45, 1  ;;  %v835_v55 = vsel %vm834_vm12, %v806_v47, %v833_v54 }
 0x4cf   : > { %v813_v51 = vadd.f32 %v812_v50, %v811_v45 }
 0x4d1   : > { %v837_v56 = vsel %vm836_vm13, %v813_v51, %v835_v55 }
 0x4d2   : > { %1359 = vmatmul.mubr.msk.f32.vlgmr.msra.gmra.mrb[4].mxu1 %vm757_vm6, %v837_v56 }
 0x4d3   : > { %1369 = vmatprep.mubr.msk.f32.mxu1 %vm1686_vm1, %v1687_v12  ;;  %1424 = vmatpush3.bf16.msra.mxu1 %v1423_v59 }
 0x4d4   : > { %1425 = vmatprep.subr.bf16.mxu1 %v1685_v5 }
 0x4d7   : > { %1427 = vmatpush3.bf16.msra.mxu1 %v1426_v62 }
 0x4d8   : > { %1428 = vmatprep.subr.bf16.mxu1 %v1685_v5 }
 0x5a5   : > { %v906_v63 = vpop.f32.mrb[4].mxu1 }
 0x5a6   : > { %v910_v1 = vadd.f32 %v906_v63, %v1993_v53  ;;  %v1360_v2 = vpop.f32.mrb[5].mxu1 }
 0x5a8   : > { %v916_v3 = vadd.f32 %v1245_v0, %v910_v1 }
 0x5aa   : > { %v917_v4 = vmax.f32 %v916_v3, 0.0 }
 0x5ac   : > { %1370 = vmatmul.mubr.msk.f32.vlgmr.msra.gmra.mrb[6].mxu1 %vm504_vm2, %v917_v4 }
 0x5ad   : > { %1380 = vmatprep.mubr.msk.f32.mxu1 %vm1686_vm1, %v1687_v12  ;;  %v1025_v12 = vld [vmem:[%s2161_s8] sm:$0xff] }
 0x67f   : > { %v996_v7 = vpop.f32.mrb[6].mxu1 }
 0x680   : > { %v997_v8 = vadd.f32 %v1246_v6, %v996_v7  ;;  %v1371_v9 = vpop.f32.mrb[7].mxu1 }
 0x682   : > { %v1000_v10 = vadd.f32 %v997_v8, %v1984_v48  ;;  %v1026_v48 = vld [vmem:[%s2161_s8 + $0x8] sm:$0xff] }
 0x683   : > { %v1429_v19 = vpack.c.bf16 %v1026_v48, %v1025_v12 }
 0x684   : > { %v1248_v11 = vmul.f32 -1.442695, %v1000_v10 }
 0x685   : > { %1430 = vmatpush3.bf16.msra.mxu1 %v1429_v19 }
 0x686   : > { %1514 = vpow2.f32 %v1248_v11  ;;  %1431 = vmatprep.subr.bf16.mxu1 %v1685_v5  ;;  %v1249_v5 = vld [vmem:[#allocation5 + $0x3] ss:$0 sm:$0xff] }
 0x690   : > { %v1515_v13 = vpop.eup %1514 }
 0x691   : > { %v1004_v14 = vadd.f32 1.0, %v1515_v13 }
 0x693   : > { %1516 = vrcp.f32 %v1004_v14 }
 0x69d   : > { %v1517_v53 = vpop.eup %1516 }
 0x69e   : > { %v1007_v15 = vmul.f32 %v1517_v53, %v1991_v52  ;;  %v1028_v52 = vld [vmem:[%s2161_s8 + $0x18] sm:$0xff]  ;;  %v1014_v23 = vsub.f32 1.0, %v1517_v53 }
 0x69f   : > { %v1432_v20 = vpack.c.bf16 %v1028_v52, %v1027_v18 }
 0x6a0   : > { %1009 = vrot.lane.b32.xlu1 %v1007_v15, %s1689_s25  ;;  %s1691_s25 = smov 32  }
 0x6a1   : > { %1433 = vmatpush3.bf16.msra.mxu1 %v1432_v20 }
 0x712   : > { %v1010_v16 = vpop.permute.xlu1 %1009 }
 0x713   : > { %v1012_v17 = vadd.f32 %v1010_v16, %v997_v8 }
 0x715   : > { %1518 = vtanh.f32 %v1012_v17 }
 0x71f   : > { %v1519_v21 = vpop.eup %1518 }
 0x720   : > { %1016 = vrot.lane.b32.xlu1 %v1519_v21, %s1690_s30 }
 0x724   : > { %1020 = vrot.lane.b32.xlu1 %v1947_v27, %s1691_s25 }
 0x792   : > { %v1017_v22 = vpop.permute.xlu1 %1016 }
 0x793   : > { %v1019_v25 = vmul.f32 %v1017_v22, %v1014_v23 }
 0x796   : > { %v1021_v24 = vpop.permute.xlu1 %1020 }
 0x797   : > { %v1023_v26 = vmul.f32 %v1517_v53, %v1021_v24 }
 0x799   : > { %v1024_v28 = vadd.f32 %v1023_v26, %v1019_v25 }
 0x79b   : > { %1035 = vrot.lane.b32.xlu0 %v1024_v28, %s1690_s30  ;;  %s1580_s30 = scalar_lea.vmem %s1148_s16, 128 }
 0x79c   : > { %p1581_p10 = scmp.ne.s32.totalorder %s1148_s16, %s1580_s30  ;;  %p1588_p7 = scmp.lt.s32.totalorder %s1580_s30, %s1580_s30 }
 0x79e   : > { %p1582_p0 = pnand %p1581_p10, %p2185_p11  ;;  %p1589_p8 = por %p1588_p7, %p1587_p4 }
 0x7a0   : > { %p1583_p3 = pneg %p1582_p0 }
 0x7a2   : > { %p1590_p12 = pnand %p1589_p8, %p1583_p3 }
 0x80d   : > { %v1036_v29 = vpop.permute.xlu0 %1035 }
 0x80e   : > { %1121 = vst.msk [vmem:[#allocation8] sm:$0xff] %vm504_vm2, %v1036_v29  ;;  %1381 = vmatmul.mubr.msk.f32.vlgmr.msra.gmra.mrb[8].mxu1 %vm504_vm2, %v1036_v29 }
 0x8e1   : > { %v1105_v30 = vpop.f32.mrb[8].mxu1 }
 0x8e2   : > { %v1106_v31 = vadd.f32 %v1249_v5, %v1105_v30  ;;  %v1382_v32 = vpop.f32.mrb[9].mxu1 }
 0x8e4   : > { %1109 = vmax.xlane.f32.xlu1 %v1106_v31 }
 0x971   : > { %v1110_v27 = vpop.xlane.xlu1 %1109 }
 0x972   : > { %v1111_v33 = vsub.f32 %v1106_v31, %v1110_v27 }
 0x974   : > { %v1112_v34 = vmul.f32 1.442695, %v1111_v33 }
 0x976   : > { %1520 = vpow2.f32 %v1112_v34 }
 0x980   : > { %v1521_v35 = vpop.eup %1520 }
 0x981   : > { %1114 = vadd.xlane.f32.xlu0 %v1521_v35 }
 0x982   : > { %1593 = shalt.err (!%p1590_p12)
}
 0x983   : > { %s1594_s22 = scalar_lea.hbm %s2164_s11, 128  ;;  %p2186_p6 = pmov %p2185_p11 }
 0x984   : > { %p1595_p2 = scmp.ne.s32.totalorder %s2164_s11, %s1594_s22  ;;  %p1600_p9 = scmp.lt.u32.totalorder %s1594_s22, %s2164_s11 }
 0x986   : > { %p1596_p1 = pnand %p1595_p2, %p2186_p6 }
 0x988   : > { %p1597_p5 = pneg %p1596_p1 }
 0x98a   : > { %p1602_p13 = pnand %p1600_p9, %p1597_p5 }
 0x98c   : > { %1605 = shalt.err (!%p1602_p13)
}
 0x98d   : > { %p2187_p10 = pmov %p2186_p6  ;;  %s1252_s26 = sshll.u32 %s1775_s21, 7 }
 0x98e   : > { %s1136_s24 = sshll.u32 %s387_s29, 4  ;;  %s2103_s19 = scalar_lea.hbm %s2163_s10, %s1252_s26  ;;  %s2105_s24 = int_to_ptr.vmem [resolvable:$true] %s1136_s24 }
 0x98f   : > { %1444 = dma.vmem_to_hbm [thread:$0]  (%p2187_p10), %s1148_s16, 128, %s2164_s11, [#allocation9]  }
 0x990   : > { %s1123_s16 = scalar_lea.sflag [#allocation4], %s385_s15  ;;  %s1606_s12 = scalar_lea.vmem %s2105_s24, 128 }
 0x991   : > { %p1607_p11 = scmp.ne.s32.totalorder %s2105_s24, %s1606_s12  ;;  %p2188_p0 = scmp.ne.s32.totalorder %s2175_s27, 0 }
 0x992   : > { %s1693_s25 = smov [#allocation7]  }
 0x993   : > { %p1608_p3 = pnand %p1607_p11, %p2188_p0  ;;  %s1610_s23 = sshll.u32 %s1693_s25, 4  ;;  %s1611_s23 = int_to_ptr.vmem [resolvable:$false] %s1610_s23 }
 0x994   : > { %s1612_s30 = scalar_lea.vmem %s1611_s23, 256  ;;  %p1613_p7 = scmp.lt.s32.totalorder %s2105_s24, %s1611_s23 }
 0x995   : > { %p1609_p4 = pneg %p1608_p3  ;;  %p1614_p8 = scmp.lt.s32.totalorder %s1612_s30, %s1606_s12 }
 0x997   : > { %p1615_p12 = por %p1614_p8, %p1613_p7 }
 0x999   : > { %p1616_p2 = pnand %p1615_p12, %p1609_p4 }
 0xa0e   : > { %v1115_v36 = vpop.xlane.xlu0 %1114 }
 0xa0f   : > { %1522 = vlog2.f32 %v1115_v36 }
 0xa19   : > { %v1523_v37 = vpop.eup %1522 }
 0xa1a   : > { %v1117_v38 = vmul.f32 0.6931472, %v1523_v37 }
 0xa1c   : > { %v1118_v39 = vsub.f32 %v1111_v33, %v1117_v38 }
 0xa1e   : > { %1119 = vst [vmem:[%s387_s29] sm:$0xff] %v1118_v39 }
 0xa1f   : > { %1619 = shalt.err (!%p1616_p2)
}
 0xa20   : > { %s1620_s15 = scalar_lea.hbm %s2103_s19, 128  ;;  %s1624_s26 = scalar_lea.hbm %s2163_s10, 768 }
 0xa21   : > { %p1621_p6 = scmp.ne.s32.totalorder %s2103_s19, %s1620_s15  ;;  %p1625_p9 = scmp.lt.u32.totalorder %s2103_s19, %s2163_s10 }
 0xa22   : > { %p1626_p13 = scmp.lt.u32.totalorder %s1624_s26, %s1620_s15  ;;  %p1628_p11 = scmp.lt.u32.totalorder %s1620_s15, %s2103_s19 }
 0xa23   : > { %p1622_p1 = pnand %p1621_p6, %p2188_p0 }
 0xa24   : > { %p1627_p10 = por %p1626_p13, %p1625_p9 }
 0xa25   : > { %p1623_p5 = pneg %p1622_p1 }
 0xa26   : > { %p1629_p3 = por %p1628_p11, %p1627_p10 }
 0xa28   : > { %p1630_p4 = pnand %p1629_p3, %p1623_p5 }
 0xa2a   : > { %1633 = shalt.err (!%p1630_p4)
}
 0xa2b   : > { %1442 = dma.vmem_to_hbm [thread:$0]  (%p2188_p0), %s2105_s24, 128, %s2103_s19, %s1123_s16  }
 0xa2c   : > { %p2189_p7 = scmp.eq.s32.totalorder %s1775_s21, 5 }
 0xa2e   : > { %1659 = dma.done.wait (%p2189_p7), [#allocation9], 128   ;;  %p2190_p8 = pmov %p2189_p7 }
 0xa30   : > { %1661 = vsyncadd (%p2190_p8), [#allocation9], 4294967168 }
 0xa31 PF: > { %p1465_p12 = scmp.ge.s32.totalorder %s1680_s20, 2  ;;  %s1163_s12 = sand.u32 1, %s1668_s17  }
 0xa32   : > { %p2191_p2 = scmp.ne.s32.totalorder %s2176_s28, 0  ;;  %s1164_s25 = scalar_lea.sflag [#allocation4], %s1163_s12 }
 0xa34   : > { %p1456_p6 = pnand %p1465_p12, %p2191_p2 }
 0xa36   : > { %1663 = dma.done.wait (!%p1456_p6), %s1164_s25, 128  }
 0xa37   : > { %1665 = vsyncadd (!%p1456_p6), %s1164_s25, 4294967168  ;;  %s2192_s20 = sld [smem:[#allocation15_spill]]  ;;  %s2193_s27 = sld [smem:[#allocation14_spill]] }
 0xa38   : > { %s2194_s19 = sld [smem:[#allocation16_spill]]  ;;  %s2195_s17 = smov %s1672_s18 }
 0xa3d   : > { %p25_p0 = scmp.ge.s32.totalorder %s2192_s20, 8   ;;  %s2196_s18 = smov %s2193_s27 }
 0xa3f   :  { %27 = sbr.rel (!%p25_p0) target bundleno = 6 (0x6), region = 114 }
 0xa46   :  { %1169 = vsyncpa [#allocation3], 1 }
 0xa47   :  { %1171 = vsyncpa [#allocation3 + $0x1], 1 }
 0xa48   :  { %1172 = vsyncpa [#allocation6], 1 }
 0xa49   :  { %1173 = vsyncpa [#allocation4], 1 }
 0xa4a   :  { %1175 = vsyncpa [#allocation4 + $0x1], 1 }
 0xa4b   :  { %1176 = vsyncpa [#allocation9], 1 }

</bundles_post_ra>
